<compile_context>
chip_gen: v6e
topology: v6e:2x2x1
jax: 0.10.0
libtpu: 0.0.40
codegen_flags: <defaults>
</compile_context>

<pallas_src>
import functools

import jax
import jax.numpy as jnp
from jax.experimental import pallas as pl
from jax.experimental.pallas import tpu as pltpu


def _cdiv(a: int, b: int) -> int:
    return -(-a // b)


def _round_up(x: int, m: int) -> int:
    return ((x + m - 1) // m) * m


def _vmem_budget_bytes() -> int:
    """Generation-aware VMEM budget: half of physical VMEM, capped at 64 MiB.

    v5e/v6e: 128 MiB physical -> 64 MiB budget.  v7x: 64 MiB -> 32 MiB budget.
    Falls back to the v7x-safe number if the trace-time query is unavailable.
    """
    cap = 64 << 20
    try:
        info = pltpu.get_tpu_info()
        for name in ("vmem_capacity_bytes", "vmem_bytes", "vmem_size_bytes"):
            val = getattr(info, name, None)
            if val:
                cap = int(val)
                break
    except Exception:
        pass
    return int(min(max(cap // 2, 16 << 20), 64 << 20))


def _plan_batch_tiling(batch, n_params, target_dim, out_itemsize, in_itemsize,
                       vmem_budget):
    """Pick (batch_tile, num_steps, padded_batch) for the 1-D grid over batch.

    Block *bytes* are what matter: aim for <= ~8 MiB output blocks (measured
    ~85% of HBM roofline) while (a) fitting double-buffered in+out blocks in
    the generation-aware VMEM budget and (b) keeping >= 2 (and an even number
    of) grid steps so both v7x TensorCores stay fed and the pipeline overlaps.
    """
    b128 = _round_up(batch, 128)                      # lane-dense loads/stores
    out_col_bytes = n_params * target_dim * out_itemsize   # per batch column
    in_col_bytes = n_params * in_itemsize
    usable = max(vmem_budget - (4 << 20), 4 << 20)
    # Steps so that 2x (out + in) blocks fit the VMEM budget.
    min_steps_vmem = _cdiv(2 * b128 * (out_col_bytes + in_col_bytes), usable)
    # Steps so each output block is <= ~8 MiB.
    min_steps_size = _cdiv(b128 * out_col_bytes, 8 << 20)
    steps = max(1, min_steps_vmem, min_steps_size)
    if b128 >= 256:
        steps = max(steps, 2)      # pipelining + both v7x TensorCores busy
    if steps > 1 and steps % 2:
        steps += 1                 # balanced split across 2 cores
    bt = _round_up(_cdiv(b128, steps), 128)
    steps = _cdiv(b128, bt)
    return bt, steps, bt * steps


def _param_encoding_kernel(params_ref, wt_ref, out_ref):
    """out[j, i, k] = W[i, j] * params[j, k]   (batch k on the lane axis).

    params_ref: (n_params, bt)             -- one batch tile
    wt_ref:     (n_params, target_dim, 1)  -- full W^T, resident for the grid
    out_ref:    (n_params, target_dim, bt) -- lane-dense: bt is a multiple of 128
    """
    # Compute in f32 regardless of input dtype (torch promotes the einsum);
    # cast only on the store.
    p = params_ref[...].astype(jnp.float32)          # (N, bt)
    w = wt_ref[...].astype(jnp.float32)              # (N, D, 1)
    out_ref[...] = (w * p[:, None, :]).astype(out_ref.dtype)


@functools.partial(jax.jit, static_argnames=("out_dtype", "lane_dense_output"))
def generic_param_encoding(params, n_param_to_target, out_dtype=None,
                           lane_dense_output=False):
    """Forward pass of GenericParamEncoding.

    params:            [n_params, batch]
    n_param_to_target: [target_dim, n_params]   (module weight W)

    Returns
      lane_dense_output=False (default): [n_params, batch, target_dim]  (module layout)
      lane_dense_output=True:            [n_params, target_dim, batch]  (kernel-native;
        preferred for downstream consumers -- avoids the wrapper-side XLA transpose)

    out[j, k, i] = W[i, j] * params[j, k].  out_dtype=None defaults to bfloat16
    for float32 inputs (halves the HBM writeback, which dominates this kernel);
    pass jnp.float32 for bit-exact parity with the torch module.
    """
    n_params, batch = params.shape
    target_dim, n_params_w = n_param_to_target.shape
    assert n_params_w == n_params

    if out_dtype is None:
        out_dtype = jnp.bfloat16 if params.dtype == jnp.float32 else params.dtype
    out_dtype = jax.dtypes.canonicalize_dtype(out_dtype)

    # W^T reshaped to (n_params, target_dim, 1) outside the kernel; kept in its
    # own dtype (no downcast) -- the kernel upcasts to f32 for the multiply.
    w3 = jnp.transpose(n_param_to_target)[:, :, None]

    vmem_budget = _vmem_budget_bytes()
    bt, steps, padded_batch = _plan_batch_tiling(
        batch, n_params, target_dim, out_dtype.itemsize,
        params.dtype.itemsize, vmem_budget)

    if padded_batch != batch:
        params = jnp.pad(params, ((0, 0), (0, padded_batch - batch)))

    out_block_bytes = n_params * target_dim * bt * out_dtype.itemsize
    par_block_bytes = n_params * bt * params.dtype.itemsize
    wt_bytes = n_params * target_dim * w3.dtype.itemsize
    vmem_bytes = int(min(
        max(2 * (out_block_bytes + par_block_bytes) + 2 * wt_bytes + (4 << 20),
            16 << 20),
        vmem_budget))

    # n_params / target_dim stay untiled (tiny; zero VMEM benefit from tiling),
    # so the grid is 1-D over batch.  W^T's index_map is constant, so it is
    # DMA'd exactly once for the whole kernel.  NOTE: keep batch as the
    # only/innermost grid axis if this is ever extended, otherwise W^T would be
    # silently re-fetched on every step.
    out = pl.pallas_call(
        _param_encoding_kernel,
        out_shape=jax.ShapeDtypeStruct((n_params, target_dim, padded_batch),
                                       out_dtype),
        grid=(steps,),
        in_specs=[
            pl.BlockSpec((n_params, bt), lambda j: (0, j)),
            pl.BlockSpec((n_params, target_dim, 1), lambda j: (0, 0, 0)),
        ],
        out_specs=pl.BlockSpec((n_params, target_dim, bt), lambda j: (0, 0, j)),
        compiler_params=pltpu.CompilerParams(
            dimension_semantics=("parallel",),
            vmem_limit_bytes=vmem_bytes,
        ),
    )(params, w3)

    if padded_batch != batch:
        out = out[:, :, :batch]
    if lane_dense_output:
        return out
    # Module-exact layout: the transpose runs in XLA outside the kernel (an
    # in-kernel minor-dim reshape/relayout would be far more expensive).
    return jnp.transpose(out, (0, 2, 1))


if __name__ == "__main__":
    n_params = 4
    target_dim = 32
    batch = 300          # deliberately NOT a multiple of 128: exercises padding

    key = jax.random.PRNGKey(0)
    k_params, k_w, k_iw = jax.random.split(key, 3)

    # Deterministic "module parameters" (synthetic init, like torch.randn).
    n_param_to_target = jax.random.normal(k_w, (target_dim, n_params), jnp.float32)
    # interaction_weights exists on the module but is unused by forward.
    interaction_weights = jax.random.normal(k_iw, (n_params, n_params), jnp.float32)

    # Input: [n_params, batch]
    params = jax.random.normal(k_params, (n_params, batch), jnp.float32)

    # Reference: faithful JAX mirror of the torch ops.
    pt = params.T                                              # [batch, n_params]
    eye = jnp.eye(n_params, dtype=params.dtype)
    diag = jnp.einsum("bj,jl->jlb", pt, eye)                   # diag_embed(params.T, dim1=0, dim2=1)
    res = jnp.transpose(diag, (0, 2, 1))                       # .transpose(1, 2) -> [N, B, N]
    ref = jnp.einsum("il,jkl->jki", n_param_to_target, res)    # [N, B, D]

    # 1) f32 output, module-exact layout: tight check.
    out_f32 = jax.block_until_ready(
        generic_param_encoding(params, n_param_to_target, out_dtype=jnp.float32))
    assert out_f32.shape == (n_params, batch, target_dim)
    max_err = float(jnp.max(jnp.abs(out_f32 - ref)))
    assert jnp.allclose(out_f32, ref, atol=1e-6, rtol=1e-6), f"max abs err = {max_err}"

    # 2) Default path: bf16 writeback (perf-review default), module layout.
    out_bf16 = jax.block_until_ready(generic_param_encoding(params, n_param_to_target))
    assert out_bf16.dtype == jnp.bfloat16
    assert out_bf16.shape == (n_params, batch, target_dim)
    assert jnp.allclose(out_bf16.astype(jnp.float32), ref, atol=5e-2, rtol=5e-2)

    # 3) Kernel-native lane-dense layout [N, D, B] for consumers that accept it.
    out_ndb = jax.block_until_ready(
        generic_param_encoding(params, n_param_to_target,
                               out_dtype=jnp.float32, lane_dense_output=True))
    assert out_ndb.shape == (n_params, target_dim, batch)
    assert jnp.allclose(jnp.transpose(out_ndb, (0, 2, 1)), ref, atol=1e-6, rtol=1e-6)

    print("KERNEL_OK")
</pallas_src>

<mosaic_0001>
module attributes {stable_mosaic.version = 11 : i64} {
  func.func @_param_encoding_kernel(%arg0: i32, %arg1: memref<4x256xf32, #tpu.memory_space<vmem>>, %arg2: memref<4x32x1xf32, #tpu.memory_space<vmem>>, %arg3: memref<4x32x256xf32, #tpu.memory_space<vmem>>) attributes {dimension_semantics = [#tpu.dimension_semantics<parallel>], iteration_bounds = array<i64: 2>, scalar_prefetch = 0 : i64, scratch_operands = 0 : i64, tpu.core_type = #tpu.core_type<tc>, window_params = [{transform_indices = @transform_0, window_bounds = array<i64: 4, 256>}, {pipeline_mode = #tpu.pipeline_mode<synchronous>, transform_indices = @transform_1, window_bounds = array<i64: 4, 32, 1>}, {transform_indices = @transform_2, window_bounds = array<i64: 4, 32, 256>}]} {
    %c0 = arith.constant 0 : index
    %c0_0 = arith.constant 0 : index
    %0 = vector.load %arg1[%c0, %c0_0] : memref<4x256xf32, #tpu.memory_space<vmem>>, vector<4x256xf32>
    %c0_1 = arith.constant 0 : index
    %c0_2 = arith.constant 0 : index
    %c0_3 = arith.constant 0 : index
    %1 = vector.load %arg2[%c0_1, %c0_2, %c0_3] : memref<4x32x1xf32, #tpu.memory_space<vmem>>, vector<4x32x1xf32>
    %2 = vector.shape_cast %0 : vector<4x256xf32> to vector<4x1x256xf32>
    %3 = vector.broadcast %1 : vector<4x32x1xf32> to vector<4x32x256xf32>
    %4 = vector.broadcast %2 : vector<4x1x256xf32> to vector<4x32x256xf32>
    %5 = arith.mulf %3, %4 : vector<4x32x256xf32>
    %c0_4 = arith.constant 0 : index
    %c0_5 = arith.constant 0 : index
    %c0_6 = arith.constant 0 : index
    %6 = vector.load %arg3[%c0_4, %c0_5, %c0_6] : memref<4x32x256xf32, #tpu.memory_space<vmem>>, vector<4x32x256xf32>
    tpu.vector_store %arg3[%c0_4, %c0_5, %c0_6], %5 {strides = array<i32>} : memref<4x32x256xf32, #tpu.memory_space<vmem>>, vector<4x32x256xf32>,
    return
  }
  func.func @transform_0(%arg0: i32) -> (i32, i32) {
    %c0_i32 = arith.constant 0 : i32
    %c0_i32_0 = arith.constant 0 : i32
    return %c0_i32, %arg0 : i32, i32
  }
  func.func @transform_1(%arg0: i32) -> (i32, i32, i32) {
    %c0_i32 = arith.constant 0 : i32
    %c0_i32_0 = arith.constant 0 : i32
    %c0_i32_1 = arith.constant 0 : i32
    %c0_i32_2 = arith.constant 0 : i32
    return %c0_i32, %c0_i32_0, %c0_i32_1 : i32, i32, i32
  }
  func.func @transform_2(%arg0: i32) -> (i32, i32, i32) {
    %c0_i32 = arith.constant 0 : i32
    %c0_i32_0 = arith.constant 0 : i32
    %c0_i32_1 = arith.constant 0 : i32
    return %c0_i32, %c0_i32_0, %arg0 : i32, i32, i32
  }
}

</mosaic_0001>

<bundles_post_ra>
// kernel: generic_param_encoding.1
= control target key start
LH: loop header
LB: loop body
LE: loop exit
PB: predicated region body
PF: predicated region fallthrough
CT: control target
= control target key end

     0   :  { %s590_s9 = smov 0   ;;  %s592_s10 = smov 0   ;;  %s800_s0 = inlined_call_operand.vmem [shape: f32[4,512], index: 0, kind: input, shape index: {}]   ;;  %s801_s1 = inlined_call_operand.vmem [shape: f32[4,32,1], index: 1, kind: input, shape index: {}]   ;;  %s802_s2 = inlined_call_operand.vmem [shape: f32[4,32,512], index: 2, kind: output, shape index: {}]  }
   0x1   :  { %s594_s11 = smov 0  }
   0x2 LB: > { %s603_s12 = sadd.s32 4294967295, %s571_s11   ;;  %s605_s13 = sadd.s32 1, %s571_s11   ;;  %s571_s11 = sphi %s594_s11, %s806_s11   ;;  %s567_s10 = sphi %s592_s10, %s805_s10   ;;  %s563_s9 = sphi %s590_s9, %s804_s9  }
   0x3   : > { %s63_s14 = ssub.s32 %s571_s11, %s605_s13  ;;  %s66_s15 = sadd.s32 1, %s567_s10 }
   0x4   : > { %p64_p0 = scmp.eq.s32.totalorder %s63_s14, 0  ;;  %p76_p1 = scmp.ne.s32.totalorder %s567_s10, %s563_s9 }
   0x5   : > { %p77_p2 = scmp.eq.s32.totalorder %s603_s12, 1  ;;  %p510_p3 = scmp.ge.s32.totalorder %s571_s11, 1 }
   0x6   : > { %s613_s16 = scalar_select %p64_p0, %s567_s10, %s66_s15  }
   0x7   : > { %p615_p4 = por %p77_p2, %p76_p1  ;;  %p113_p5 = scmp.lt.s32.totalorder %s571_s11, 3 }
   0x9   : > { %p114_p6 = pnand %p510_p3, %p113_p5 }
   0xa   : > { %s512_s28 = sshll.u32 (!%p114_p6), %s603_s12, 1  ;;  %s131_s5 = sand.u32 (!%p114_p6), 1, %s563_s9  }
   0xb   : > { %117 = sbr.rel (%p114_p6) target bundleno = 183 (0xb7), region = 28  ;;  %p135_p7 = scmp.lt.s32.totalorder (!%p114_p6), %s512_s28, 3 }
   0xc   : > { %s511_s6 = sshll.u32 (!%p114_p6), %s131_s5, 8 }
   0xd   : > { %s678_s7 = scalar_lea.vmem (!%p114_p6), [#allocation2], %s511_s6 }
  0x10   : > { %v144_v0 = vld [vmem:[%s801_s1 + $0x10] sm:$0xff]  ;;  %v142_v1 = vld [vmem:[%s801_s1] sm:$0xff]  ;;  %v573_v2 = vmov 0   ;;  %v145_v3 = vld [vmem:[%s801_s1 + $0x18] sm:$0xff]  ;;  %s808_s28 = smov (!%p135_p7, %s512_s28), 3  ;;  %v170_v19 = vlaneseq  ;;  %s520_s9 = sshll.u32 (%p615_p4), %s603_s12, 4 }
  0x11   : > { %548 = vset.pattern.permute.xlu1 %v573_v2  ;;  %547 = vset.pattern.permute.xlu0 %v573_v2  ;;  %v143_v4 = vld [vmem:[%s801_s1 + $0x8] sm:$0xff]  ;;  %v146_v6 = vld [vmem:[%s801_s1 + $0x20] sm:$0xff]  ;;  %v149_v7 = vld [vmem:[%s801_s1 + $0x38] sm:$0xff]  ;;  %v574_v17 = vmov 1966171168   ;;  %s513_s29 = sshll.u32 %s808_s28, 2  ;;  %s727_s14 = scalar_lea.vmem (%p615_p4), %s802_s2, %s520_s9 }
  0x12   : > { %195 = vperm.xlu1 %548, %v144_v0   ;;  %185 = vperm.xlu0 %547, %v142_v1   ;;  %v147_v5 = vld [vmem:[%s801_s1 + $0x28] sm:$0xff]  ;;  %v148_v8 = vld [vmem:[%s801_s1 + $0x30] sm:$0xff]  ;;  %v150_v10 = vld [vmem:[%s801_s1 + $0x40] sm:$0xff]  ;;  %v168_v18 = vunpack.c.l.s4 %v574_v17  ;;  %v171_v21 = vshrl.u32 %v170_v19, 7  ;;  %s138_s4 = scalar_lea.vmem %s800_s0, %s513_s29 }
  0x13   : > { %v151_v9 = vld [vmem:[%s801_s1 + $0x48] sm:$0xff]  ;;  %v153_v11 = vld [vmem:[%s801_s1 + $0x58] sm:$0xff]  ;;  %v152_v12 = vld [vmem:[%s801_s1 + $0x50] sm:$0xff] }
  0x14   : > { %v155_v13 = vld [vmem:[%s801_s1 + $0x68] sm:$0xff]  ;;  %v154_v14 = vld [vmem:[%s801_s1 + $0x60] sm:$0xff]  ;;  %v157_v15 = vld [vmem:[%s801_s1 + $0x78] sm:$0xff]  ;;  %v169_v20 = vunpack.c.0.s8 %v168_v18  ;;  %v671_v24 = vsub.s32 0, %v171_v21  ;;  %v673_v25 = vsub.s32 1, %v171_v21 }
  0x15   : > { %v156_v16 = vld [vmem:[%s801_s1 + $0x70] sm:$0xff]  ;;  %v514_v23 = vld.sshfl [vmem:[%s138_s4] sm:$0xff pattern:$0x75316420] }
  0x16   : > { %200 = vperm.xlu1 %548, %v145_v3   ;;  %190 = vperm.xlu0 %547, %v143_v4   ;;  %v172_v22 = vsub.s32 %v169_v20, %v171_v21  ;;  %v166_v27 = vcombine.high %v514_v23, %v514_v23 }
  0x18   : > { %v173_v26 = vrot.slane %v514_v23, %v172_v22  ;;  %v180_v32 = vrot.slane %v166_v27, %v172_v22 }
  0x1a   : > { %210 = vperm.xlu1 %548, %v147_v5   ;;  %205 = vperm.xlu0 %547, %v146_v6   ;;  %v266_v28 = vrot.slane %v173_v26, %v671_v24  ;;  %v270_v29 = vrot.slane %v173_v26, %v673_v25  ;;  %v274_v39 = vrot.slane %v180_v32, %v671_v24 }
  0x1b   : > { %v278_v40 = vrot.slane %v180_v32, %v673_v25  ;;  %v181_v47 = vcombine.high %v173_v26, %v173_v26  ;;  %v182_v62 = vcombine.high %v180_v32, %v180_v32 }
  0x1d   : > { %v282_v54 = vrot.slane %v181_v47, %v671_v24  ;;  %v286_v55 = vrot.slane %v181_v47, %v673_v25  ;;  %v290_v5 = vrot.slane %v182_v62, %v671_v24  ;;  %v294_v6 = vrot.slane %v182_v62, %v673_v25 }
  0x1e   : > { %220 = vperm.xlu1 %548, %v149_v7   ;;  %215 = vperm.xlu0 %547, %v148_v8  }
  0x22   : > { %230 = vperm.xlu1 %548, %v151_v9   ;;  %225 = vperm.xlu0 %547, %v150_v10  }
  0x26   : > { %240 = vperm.xlu1 %548, %v153_v11   ;;  %235 = vperm.xlu0 %547, %v152_v12  }
  0x2a   : > { %250 = vperm.xlu1 %548, %v155_v13   ;;  %245 = vperm.xlu0 %547, %v154_v14  }
  0x2e   : > { %260 = vperm.xlu1 %548, %v157_v15   ;;  %255 = vperm.xlu0 %547, %v156_v16  }
  0x8d   : > { %v196_v30 = vpop.permute.xlu1 %195  ;;  %v186_v31 = vpop.permute.xlu0 %185 }
  0x8e   : > { %v307_v33 = vmul.f32 %v266_v28, %v196_v30  ;;  %v308_v34 = vmul.f32 %v270_v29, %v196_v30  ;;  %v303_v35 = vmul.f32 %v266_v28, %v186_v31  ;;  %v304_v36 = vmul.f32 %v270_v29, %v186_v31 }
  0x90   : > { %339 = vst [vmem:[%s678_s7 + $0x20] sm:$0xff] %v307_v33  ;;  %340 = vst [vmem:[%s678_s7 + $0x28] sm:$0xff] %v308_v34 }
  0x91   : > { %335 = vst [vmem:[%s678_s7] sm:$0xff] %v303_v35  ;;  %336 = vst [vmem:[%s678_s7 + $0x8] sm:$0xff] %v304_v36  ;;  %v201_v37 = vpop.permute.xlu1 %200  ;;  %v191_v38 = vpop.permute.xlu0 %190 }
  0x92   : > { %v309_v41 = vmul.f32 %v266_v28, %v201_v37  ;;  %v310_v42 = vmul.f32 %v270_v29, %v201_v37  ;;  %v305_v43 = vmul.f32 %v266_v28, %v191_v38  ;;  %v306_v44 = vmul.f32 %v270_v29, %v191_v38 }
  0x94   : > { %341 = vst [vmem:[%s678_s7 + $0x30] sm:$0xff] %v309_v41  ;;  %342 = vst [vmem:[%s678_s7 + $0x38] sm:$0xff] %v310_v42 }
  0x95   : > { %337 = vst [vmem:[%s678_s7 + $0x10] sm:$0xff] %v305_v43  ;;  %338 = vst [vmem:[%s678_s7 + $0x18] sm:$0xff] %v306_v44  ;;  %v211_v45 = vpop.permute.xlu1 %210  ;;  %v206_v46 = vpop.permute.xlu0 %205 }
  0x96   : > { %v313_v48 = vmul.f32 %v274_v39, %v211_v45  ;;  %v314_v49 = vmul.f32 %v278_v40, %v211_v45  ;;  %v311_v50 = vmul.f32 %v274_v39, %v206_v46  ;;  %v312_v51 = vmul.f32 %v278_v40, %v206_v46 }
  0x97   : > { %v397_v27 = vld [vmem:[%s678_s7 + $0x20] sm:$0xff] (%p615_p4)  ;;  %v399_v28 = vld [vmem:[%s678_s7 + $0x28] sm:$0xff] (%p615_p4) }
  0x98   : > { %345 = vst [vmem:[%s678_s7 + $0x50] sm:$0xff] %v313_v48  ;;  %346 = vst [vmem:[%s678_s7 + $0x58] sm:$0xff] %v314_v49  ;;  %v389_v23 = vld [vmem:[%s678_s7] sm:$0xff] (%p615_p4)  ;;  %v391_v24 = vld [vmem:[%s678_s7 + $0x8] sm:$0xff] (%p615_p4) }
  0x99   : > { %343 = vst [vmem:[%s678_s7 + $0x40] sm:$0xff] %v311_v50  ;;  %344 = vst [vmem:[%s678_s7 + $0x48] sm:$0xff] %v312_v51  ;;  %v221_v52 = vpop.permute.xlu1 %220  ;;  %v216_v53 = vpop.permute.xlu0 %215 }
  0x9a   : > { %v317_v56 = vmul.f32 %v274_v39, %v221_v52  ;;  %v318_v57 = vmul.f32 %v278_v40, %v221_v52  ;;  %v315_v58 = vmul.f32 %v274_v39, %v216_v53  ;;  %v316_v59 = vmul.f32 %v278_v40, %v216_v53  ;;  %390 = vst [vmem:[%s727_s14] sm:$0xff] (%p615_p4), %v389_v23 }
  0x9b   : > { %392 = vst [vmem:[%s727_s14 + $0x8] sm:$0xff] (%p615_p4), %v391_v24  ;;  %398 = vst [vmem:[%s727_s14 + $0x40] sm:$0xff] (%p615_p4), %v397_v27  ;;  %v401_v29 = vld [vmem:[%s678_s7 + $0x30] sm:$0xff] (%p615_p4)  ;;  %v403_v30 = vld [vmem:[%s678_s7 + $0x38] sm:$0xff] (%p615_p4) }
  0x9c   : > { %349 = vst [vmem:[%s678_s7 + $0x70] sm:$0xff] %v317_v56  ;;  %350 = vst [vmem:[%s678_s7 + $0x78] sm:$0xff] %v318_v57  ;;  %v393_v25 = vld [vmem:[%s678_s7 + $0x10] sm:$0xff] (%p615_p4)  ;;  %v395_v26 = vld [vmem:[%s678_s7 + $0x18] sm:$0xff] (%p615_p4) }
  0x9d   : > { %347 = vst [vmem:[%s678_s7 + $0x60] sm:$0xff] %v315_v58  ;;  %348 = vst [vmem:[%s678_s7 + $0x68] sm:$0xff] %v316_v59  ;;  %v231_v60 = vpop.permute.xlu1 %230  ;;  %v226_v61 = vpop.permute.xlu0 %225 }
  0x9e   : > { %v321_v63 = vmul.f32 %v282_v54, %v231_v60  ;;  %v322_v0 = vmul.f32 %v286_v55, %v231_v60  ;;  %v319_v1 = vmul.f32 %v282_v54, %v226_v61  ;;  %v320_v2 = vmul.f32 %v286_v55, %v226_v61  ;;  %394 = vst [vmem:[%s727_s14 + $0x20] sm:$0xff] (%p615_p4), %v393_v25 }
  0x9f   : > { %396 = vst [vmem:[%s727_s14 + $0x28] sm:$0xff] (%p615_p4), %v395_v26  ;;  %400 = vst [vmem:[%s727_s14 + $0x48] sm:$0xff] (%p615_p4), %v399_v28  ;;  %v409_v33 = vld [vmem:[%s678_s7 + $0x50] sm:$0xff] (%p615_p4)  ;;  %v411_v34 = vld [vmem:[%s678_s7 + $0x58] sm:$0xff] (%p615_p4) }
  0xa0   : > { %353 = vst [vmem:[%s678_s7 + $0x90] sm:$0xff] %v321_v63  ;;  %354 = vst [vmem:[%s678_s7 + $0x98] sm:$0xff] %v322_v0  ;;  %v405_v31 = vld [vmem:[%s678_s7 + $0x40] sm:$0xff] (%p615_p4)  ;;  %v407_v32 = vld [vmem:[%s678_s7 + $0x48] sm:$0xff] (%p615_p4) }
  0xa1   : > { %351 = vst [vmem:[%s678_s7 + $0x80] sm:$0xff] %v319_v1  ;;  %352 = vst [vmem:[%s678_s7 + $0x88] sm:$0xff] %v320_v2  ;;  %v241_v3 = vpop.permute.xlu1 %240  ;;  %v236_v4 = vpop.permute.xlu0 %235 }
  0xa2   : > { %v325_v7 = vmul.f32 %v282_v54, %v241_v3  ;;  %v326_v8 = vmul.f32 %v286_v55, %v241_v3  ;;  %v323_v9 = vmul.f32 %v282_v54, %v236_v4  ;;  %v324_v10 = vmul.f32 %v286_v55, %v236_v4  ;;  %402 = vst [vmem:[%s727_s14 + $0x60] sm:$0xff] (%p615_p4), %v401_v29 }
  0xa3   : > { %404 = vst [vmem:[%s727_s14 + $0x68] sm:$0xff] (%p615_p4), %v403_v30  ;;  %406 = vst [vmem:[%s727_s14 + $0x80] sm:$0xff] (%p615_p4), %v405_v31  ;;  %v417_v37 = vld [vmem:[%s678_s7 + $0x70] sm:$0xff] (%p615_p4)  ;;  %v419_v38 = vld [vmem:[%s678_s7 + $0x78] sm:$0xff] (%p615_p4) }
  0xa4   : > { %357 = vst [vmem:[%s678_s7 + $0xb0] sm:$0xff] %v325_v7  ;;  %358 = vst [vmem:[%s678_s7 + $0xb8] sm:$0xff] %v326_v8  ;;  %v413_v35 = vld [vmem:[%s678_s7 + $0x60] sm:$0xff] (%p615_p4)  ;;  %v415_v36 = vld [vmem:[%s678_s7 + $0x68] sm:$0xff] (%p615_p4) }
  0xa5   : > { %355 = vst [vmem:[%s678_s7 + $0xa0] sm:$0xff] %v323_v9  ;;  %356 = vst [vmem:[%s678_s7 + $0xa8] sm:$0xff] %v324_v10  ;;  %v251_v11 = vpop.permute.xlu1 %250  ;;  %v246_v12 = vpop.permute.xlu0 %245 }
  0xa6   : > { %v329_v13 = vmul.f32 %v290_v5, %v251_v11  ;;  %v330_v14 = vmul.f32 %v294_v6, %v251_v11  ;;  %v327_v15 = vmul.f32 %v290_v5, %v246_v12  ;;  %v328_v16 = vmul.f32 %v294_v6, %v246_v12  ;;  %408 = vst [vmem:[%s727_s14 + $0x88] sm:$0xff] (%p615_p4), %v407_v32 }
  0xa7   : > { %410 = vst [vmem:[%s727_s14 + $0xa0] sm:$0xff] (%p615_p4), %v409_v33  ;;  %412 = vst [vmem:[%s727_s14 + $0xa8] sm:$0xff] (%p615_p4), %v411_v34  ;;  %v425_v41 = vld [vmem:[%s678_s7 + $0x90] sm:$0xff] (%p615_p4)  ;;  %v427_v42 = vld [vmem:[%s678_s7 + $0x98] sm:$0xff] (%p615_p4) }
  0xa8   : > { %361 = vst [vmem:[%s678_s7 + $0xd0] sm:$0xff] %v329_v13  ;;  %362 = vst [vmem:[%s678_s7 + $0xd8] sm:$0xff] %v330_v14  ;;  %v421_v39 = vld [vmem:[%s678_s7 + $0x80] sm:$0xff] (%p615_p4)  ;;  %v423_v40 = vld [vmem:[%s678_s7 + $0x88] sm:$0xff] (%p615_p4) }
  0xa9   : > { %359 = vst [vmem:[%s678_s7 + $0xc0] sm:$0xff] %v327_v15  ;;  %360 = vst [vmem:[%s678_s7 + $0xc8] sm:$0xff] %v328_v16  ;;  %v261_v17 = vpop.permute.xlu1 %260  ;;  %v256_v18 = vpop.permute.xlu0 %255  ;;  %373 = sbr.rel (!%p615_p4) target bundleno = 183 (0xb7), region = 32 }
  0xaa   : > { %v333_v19 = vmul.f32 %v290_v5, %v261_v17  ;;  %v334_v20 = vmul.f32 %v294_v6, %v261_v17  ;;  %v331_v21 = vmul.f32 %v290_v5, %v256_v18  ;;  %v332_v22 = vmul.f32 %v294_v6, %v256_v18  ;;  %414 = vst [vmem:[%s727_s14 + $0xc0] sm:$0xff] (%p615_p4), %v413_v35 }
  0xab   : > { %416 = vst [vmem:[%s727_s14 + $0xc8] sm:$0xff] (%p615_p4), %v415_v36  ;;  %418 = vst [vmem:[%s727_s14 + $0xe0] sm:$0xff] (%p615_p4), %v417_v37  ;;  %v433_v45 = vld [vmem:[%s678_s7 + $0xb0] sm:$0xff] (%p615_p4)  ;;  %v435_v46 = vld [vmem:[%s678_s7 + $0xb8] sm:$0xff] (%p615_p4) }
  0xac   : > { %365 = vst [vmem:[%s678_s7 + $0xf0] sm:$0xff] %v333_v19  ;;  %366 = vst [vmem:[%s678_s7 + $0xf8] sm:$0xff] %v334_v20  ;;  %v429_v43 = vld [vmem:[%s678_s7 + $0xa0] sm:$0xff] (%p615_p4)  ;;  %v431_v44 = vld [vmem:[%s678_s7 + $0xa8] sm:$0xff] (%p615_p4) }
  0xad   : > { %363 = vst [vmem:[%s678_s7 + $0xe0] sm:$0xff] %v331_v21  ;;  %364 = vst [vmem:[%s678_s7 + $0xe8] sm:$0xff] %v332_v22 }
  0xae   : > { %420 = vst [vmem:[%s727_s14 + $0xe8] sm:$0xff] %v419_v38  ;;  %422 = vst [vmem:[%s727_s14 + $0x100] sm:$0xff] %v421_v39 }
  0xaf   : > { %424 = vst [vmem:[%s727_s14 + $0x108] sm:$0xff] %v423_v40  ;;  %426 = vst [vmem:[%s727_s14 + $0x120] sm:$0xff] %v425_v41  ;;  %v441_v49 = vld [vmem:[%s678_s7 + $0xd0] sm:$0xff]  ;;  %v443_v50 = vld [vmem:[%s678_s7 + $0xd8] sm:$0xff] }
  0xb0   : > { %428 = vst [vmem:[%s727_s14 + $0x128] sm:$0xff] %v427_v42  ;;  %430 = vst [vmem:[%s727_s14 + $0x140] sm:$0xff] %v429_v43  ;;  %v437_v47 = vld [vmem:[%s678_s7 + $0xc0] sm:$0xff]  ;;  %v439_v48 = vld [vmem:[%s678_s7 + $0xc8] sm:$0xff] }
  0xb1   : > { %432 = vst [vmem:[%s727_s14 + $0x148] sm:$0xff] %v431_v44  ;;  %434 = vst [vmem:[%s727_s14 + $0x160] sm:$0xff] %v433_v45 }
  0xb2   : > { %436 = vst [vmem:[%s727_s14 + $0x168] sm:$0xff] %v435_v46  ;;  %438 = vst [vmem:[%s727_s14 + $0x180] sm:$0xff] %v437_v47 }
  0xb3   : > { %440 = vst [vmem:[%s727_s14 + $0x188] sm:$0xff] %v439_v48  ;;  %442 = vst [vmem:[%s727_s14 + $0x1a0] sm:$0xff] %v441_v49  ;;  %v449_v53 = vld [vmem:[%s678_s7 + $0xf0] sm:$0xff]  ;;  %v451_v54 = vld [vmem:[%s678_s7 + $0xf8] sm:$0xff] }
  0xb4   : > { %v445_v51 = vld [vmem:[%s678_s7 + $0xe0] sm:$0xff]  ;;  %v447_v52 = vld [vmem:[%s678_s7 + $0xe8] sm:$0xff]  ;;  %444 = vst [vmem:[%s727_s14 + $0x1a8] sm:$0xff] %v443_v50  ;;  %450 = vst [vmem:[%s727_s14 + $0x1e0] sm:$0xff] %v449_v53 }
  0xb5   : > { %446 = vst [vmem:[%s727_s14 + $0x1c0] sm:$0xff] %v445_v51  ;;  %448 = vst [vmem:[%s727_s14 + $0x1c8] sm:$0xff] %v447_v52 }
  0xb6   : > { %452 = vst [vmem:[%s727_s14 + $0x1e8] sm:$0xff] %v451_v54 }
  0xb7 PF: > { %p9_p8 = scmp.ge.s32.totalorder %s605_s13, 4   ;;  %s804_s9 = smov %s567_s10 }
  0xb8   : > { %s805_s10 = smov %s613_s16  ;;  %s806_s11 = smov %s605_s13 }
  0xb9   :  { %11 = sbr.rel (!%p9_p8) target bundleno = 2 (0x2), region = 81 }

</bundles_post_ra>
